<compile_context>
chip_gen: v7x
topology: tpu7x:2x2x1
jax: 0.10.0
libtpu: 0.0.40
codegen_flags: <defaults>
</compile_context>

<pallas_src>
import functools

import jax
import jax.numpy as jnp
from jax import lax
from jax.experimental import pallas as pl
from jax.experimental.pallas import tpu as pltpu

BN_EPS = 1e-5
_NT_DIMS = (((1,), (1,)), ((), ()))   # contract last dim of both operands: x @ W^T


def _round_up(a, b):
    return (a + b - 1) // b * b


# --------------------------------------------------------------------------- #
# Kernel A: fused batch statistics + BN->Linear folding
# grid = (n_tiles,) over the (padded) batch dim; cross-tile reduction => "arbitrary"
# --------------------------------------------------------------------------- #
def _bn_fold_kernel(x_ref, gamma_ref, beta_ref, w_ref, b_ref,
                    ws_ref, be_ref, sum_ref, sumsq_ref, *, inv_n):
    i = pl.program_id(0)

    @pl.when(i == 0)
    def _init():
        sum_ref[...] = jnp.zeros_like(sum_ref)
        sumsq_ref[...] = jnp.zeros_like(sumsq_ref)

    # Single fused pass over this x tile: sum and sum of squares (f32 accumulation).
    x = x_ref[...].astype(jnp.float32)                        # (tile_n, D)
    sum_ref[...] += jnp.sum(x, axis=0, keepdims=True)         # (1, D)
    sumsq_ref[...] += jnp.sum(x * x, axis=0, keepdims=True)   # (1, D)

    @pl.when(i == pl.num_programs(0) - 1)
    def _finalize():
        mean = sum_ref[...] * inv_n                                # (1, D)
        var = jnp.maximum(sumsq_ref[...] * inv_n - mean * mean, 0.0)
        scale = gamma_ref[...] * lax.rsqrt(var + BN_EPS)           # (1, D)
        shift = beta_ref[...] - mean * scale                       # (1, D)
        w = w_ref[...]                                             # (C_pad, D)
        ws_ref[...] = w * scale                                    # fold BN scale into W rows
        # Effective bias = shift @ W^T + b.  Broadcast shift to 8 rows so the tiny
        # matmul uses a native sublane count, then keep row 0.
        shift8 = jnp.broadcast_to(shift, (8, shift.shape[1]))
        be8 = lax.dot_general(shift8, w, _NT_DIMS,
                              preferred_element_type=jnp.float32)  # (8, C_pad)
        be_ref[...] = be8[0:1, :] + b_ref[...]                     # (1, C_pad)


# --------------------------------------------------------------------------- #
# Kernel B: out = x @ Ws^T + be, tiled over N ("parallel" => megacore-friendly)
# --------------------------------------------------------------------------- #
def _folded_matmul_kernel(x_ref, ws_ref, be_ref, out_ref):
    x = x_ref[...].astype(jnp.float32)                         # (tile_n, D)
    out_ref[...] = lax.dot_general(
        x, ws_ref[...], _NT_DIMS,
        preferred_element_type=jnp.float32) + be_ref[...]      # (tile_n, C_pad)


def logistic_regression_forward(x, bn_gamma, bn_beta, fc_weight, fc_bias, *,
                                tile_n=512):
    """x: (N, D); bn_gamma/bn_beta: (D,); fc_weight: (C, D) [PyTorch layout]; fc_bias: (C,)."""
    N, D = x.shape
    C = fc_weight.shape[0]

    # Lane-dense class dimension: pad C up to a multiple of 128 with zero rows/cols.
    c_pad = _round_up(C, 128)
    w_p = jnp.pad(fc_weight.astype(jnp.float32), ((0, c_pad - C), (0, 0)))       # (C_pad, D)
    b_p = jnp.pad(fc_bias.astype(jnp.float32), (0, c_pad - C)).reshape(1, c_pad)  # (1, C_pad)
    gamma2 = bn_gamma.reshape(1, D).astype(jnp.float32)
    beta2 = bn_beta.reshape(1, D).astype(jnp.float32)

    # Batch tiling (zero-row padding is stats-neutral; true 1/N baked into kernel A).
    tile_n = min(tile_n, _round_up(N, 8))
    n_pad = _round_up(N, tile_n)
    x_p = jnp.pad(x, ((0, n_pad - N), (0, 0))) if n_pad != N else x
    n_tiles = n_pad // tile_n

    # ---- pass 1: batch stats + fold BN into the linear layer ---------------- #
    ws, be = pl.pallas_call(
        functools.partial(_bn_fold_kernel, inv_n=1.0 / N),
        out_shape=(jax.ShapeDtypeStruct((c_pad, D), jnp.float32),
                   jax.ShapeDtypeStruct((1, c_pad), jnp.float32)),
        grid_spec=pltpu.PrefetchScalarGridSpec(
            num_scalar_prefetch=0,
            grid=(n_tiles,),
            in_specs=[
                pl.BlockSpec((tile_n, D), lambda i: (i, 0)),
                pl.BlockSpec((1, D), lambda i: (0, 0)),
                pl.BlockSpec((1, D), lambda i: (0, 0)),
                pl.BlockSpec((c_pad, D), lambda i: (0, 0)),
                pl.BlockSpec((1, c_pad), lambda i: (0, 0)),
            ],
            out_specs=[
                pl.BlockSpec((c_pad, D), lambda i: (0, 0)),
                pl.BlockSpec((1, c_pad), lambda i: (0, 0)),
            ],
            scratch_shapes=[pltpu.VMEM((1, D), jnp.float32),
                            pltpu.VMEM((1, D), jnp.float32)],
        ),
        compiler_params=pltpu.CompilerParams(
            dimension_semantics=("arbitrary",)),
    )(x_p, gamma2, beta2, w_p, b_p)

    # ---- pass 2: folded matmul, lane-dense output --------------------------- #
    out_p = pl.pallas_call(
        _folded_matmul_kernel,
        out_shape=jax.ShapeDtypeStruct((n_pad, c_pad), jnp.float32),
        grid_spec=pltpu.PrefetchScalarGridSpec(
            num_scalar_prefetch=0,
            grid=(n_tiles,),
            in_specs=[
                pl.BlockSpec((tile_n, D), lambda i: (i, 0)),
                pl.BlockSpec((c_pad, D), lambda i: (0, 0)),
                pl.BlockSpec((1, c_pad), lambda i: (0, 0)),
            ],
            out_specs=pl.BlockSpec((tile_n, c_pad), lambda i: (i, 0)),
        ),
        compiler_params=pltpu.CompilerParams(
            dimension_semantics=("parallel",)),
    )(x_p, ws, be)

    return {"out": out_p[:N, :C]}


def _reference_forward(x, bn_gamma, bn_beta, fc_weight, fc_bias):
    mean = jnp.mean(x, axis=0, keepdims=True)
    var = jnp.mean((x - mean) ** 2, axis=0, keepdims=True)   # biased (training-mode BN)
    y = (x - mean) / jnp.sqrt(var + BN_EPS) * bn_gamma + bn_beta
    return y @ fc_weight.T + fc_bias


if __name__ == "__main__":
    # cfg = {'input_size': 32, 'num_classes': 10}
    batch, input_size, num_classes = 8, 32, 10

    key = jax.random.PRNGKey(0)
    kx, kw, kb = jax.random.split(key, 3)

    x = jax.random.normal(kx, (batch, input_size), dtype=jnp.float32)

    # BatchNorm1d default init: weight=1, bias=0
    bn_gamma = jnp.ones((input_size,), dtype=jnp.float32)
    bn_beta = jnp.zeros((input_size,), dtype=jnp.float32)

    # Linear init (deterministic synthetic, PyTorch-like uniform bound 1/sqrt(fan_in))
    bound = 1.0 / jnp.sqrt(jnp.float32(input_size))
    fc_weight = jax.random.uniform(kw, (num_classes, input_size),
                                   minval=-bound, maxval=bound, dtype=jnp.float32)
    fc_bias = jax.random.uniform(kb, (num_classes,),
                                 minval=-bound, maxval=bound, dtype=jnp.float32)

    result = logistic_regression_forward(x, bn_gamma, bn_beta, fc_weight, fc_bias)
    out = jax.block_until_ready(result["out"])

    ref = _reference_forward(x, bn_gamma, bn_beta, fc_weight, fc_bias)
    assert out.shape == (batch, num_classes)
    assert jnp.allclose(out, ref, atol=1e-4, rtol=1e-4), "mismatch vs reference"

    print("KERNEL_OK")
</pallas_src>

<mosaic_0001>
module attributes {stable_mosaic.version = 11 : i64} {
  func.func @_bn_fold_kernel(%arg0: i32, %arg1: memref<8x32xf32, #tpu.memory_space<vmem>>, %arg2: memref<1x32xf32, #tpu.memory_space<vmem>>, %arg3: memref<1x32xf32, #tpu.memory_space<vmem>>, %arg4: memref<128x32xf32, #tpu.memory_space<vmem>>, %arg5: memref<1x128xf32, #tpu.memory_space<vmem>>, %arg6: memref<128x32xf32, #tpu.memory_space<vmem>>, %arg7: memref<1x128xf32, #tpu.memory_space<vmem>>, %arg8: memref<1x32xf32, #tpu.memory_space<vmem>>, %arg9: memref<1x32xf32, #tpu.memory_space<vmem>>) attributes {dimension_semantics = [#tpu.dimension_semantics<arbitrary>], iteration_bounds = array<i64: 1>, scalar_prefetch = 0 : i64, scratch_operands = 2 : i64, tpu.core_type = #tpu.core_type<tc>, window_params = [{transform_indices = @transform_0, window_bounds = array<i64: 8, 32>}, {pipeline_mode = #tpu.pipeline_mode<synchronous>, transform_indices = @transform_1, window_bounds = array<i64: 1, 32>}, {pipeline_mode = #tpu.pipeline_mode<synchronous>, transform_indices = @transform_2, window_bounds = array<i64: 1, 32>}, {pipeline_mode = #tpu.pipeline_mode<synchronous>, transform_indices = @transform_3, window_bounds = array<i64: 128, 32>}, {pipeline_mode = #tpu.pipeline_mode<synchronous>, transform_indices = @transform_4, window_bounds = array<i64: 1, 128>}, {pipeline_mode = #tpu.pipeline_mode<synchronous>, transform_indices = @transform_5, window_bounds = array<i64: 128, 32>}, {pipeline_mode = #tpu.pipeline_mode<synchronous>, transform_indices = @transform_6, window_bounds = array<i64: 1, 128>}]} {
    %c0_i32 = arith.constant 0 : i32
    %0 = arith.cmpi eq, %arg0, %c0_i32 : i32
    %1 = arith.extui %0 : i1 to i32
    %c0_i32_0 = arith.constant 0 : i32
    %2 = arith.cmpi ne, %1, %c0_i32_0 : i32
    scf.if %2 {
      %cst_13 = arith.constant 0.000000e+00 : f32
      %18 = vector.broadcast %cst_13 : f32 to vector<1x32xf32>
      %c0_14 = arith.constant 0 : index
      %c0_15 = arith.constant 0 : index
      %19 = vector.load %arg8[%c0_14, %c0_15] : memref<1x32xf32, #tpu.memory_space<vmem>>, vector<1x32xf32>
      tpu.vector_store %arg8[%c0_14, %c0_15], %18 {strides = array<i32>} : memref<1x32xf32, #tpu.memory_space<vmem>>, vector<1x32xf32>,
      %cst_16 = arith.constant 0.000000e+00 : f32
      %20 = vector.broadcast %cst_16 : f32 to vector<1x32xf32>
      %c0_17 = arith.constant 0 : index
      %c0_18 = arith.constant 0 : index
      %21 = vector.load %arg9[%c0_17, %c0_18] : memref<1x32xf32, #tpu.memory_space<vmem>>, vector<1x32xf32>
      tpu.vector_store %arg9[%c0_17, %c0_18], %20 {strides = array<i32>} : memref<1x32xf32, #tpu.memory_space<vmem>>, vector<1x32xf32>,
    } else {
    }
    %c0 = arith.constant 0 : index
    %c0_1 = arith.constant 0 : index
    %3 = vector.load %arg1[%c0, %c0_1] : memref<8x32xf32, #tpu.memory_space<vmem>>, vector<8x32xf32>
    %c0_2 = arith.constant 0 : index
    %c0_3 = arith.constant 0 : index
    %4 = vector.load %arg8[%c0_2, %c0_3] : memref<1x32xf32, #tpu.memory_space<vmem>>, vector<1x32xf32>
    %cst = arith.constant dense<0.000000e+00> : vector<32xf32>
    %5 = vector.multi_reduction <add>, %3, %cst [0] : vector<8x32xf32> to vector<32xf32>
    %6 = vector.shape_cast %5 : vector<32xf32> to vector<1x32xf32>
    %7 = arith.addf %4, %6 : vector<1x32xf32>
    %c0_4 = arith.constant 0 : index
    %c0_5 = arith.constant 0 : index
    %8 = vector.load %arg8[%c0_4, %c0_5] : memref<1x32xf32, #tpu.memory_space<vmem>>, vector<1x32xf32>
    tpu.vector_store %arg8[%c0_4, %c0_5], %7 {strides = array<i32>} : memref<1x32xf32, #tpu.memory_space<vmem>>, vector<1x32xf32>,
    %c0_6 = arith.constant 0 : index
    %c0_7 = arith.constant 0 : index
    %9 = vector.load %arg9[%c0_6, %c0_7] : memref<1x32xf32, #tpu.memory_space<vmem>>, vector<1x32xf32>
    %10 = arith.mulf %3, %3 : vector<8x32xf32>
    %cst_8 = arith.constant dense<0.000000e+00> : vector<32xf32>
    %11 = vector.multi_reduction <add>, %10, %cst_8 [0] : vector<8x32xf32> to vector<32xf32>
    %12 = vector.shape_cast %11 : vector<32xf32> to vector<1x32xf32>
    %13 = arith.addf %9, %12 : vector<1x32xf32>
    %c0_9 = arith.constant 0 : index
    %c0_10 = arith.constant 0 : index
    %14 = vector.load %arg9[%c0_9, %c0_10] : memref<1x32xf32, #tpu.memory_space<vmem>>, vector<1x32xf32>
    tpu.vector_store %arg9[%c0_9, %c0_10], %13 {strides = array<i32>} : memref<1x32xf32, #tpu.memory_space<vmem>>, vector<1x32xf32>,
    %c0_i32_11 = arith.constant 0 : i32
    %15 = arith.cmpi eq, %arg0, %c0_i32_11 : i32
    %16 = arith.extui %15 : i1 to i32
    %c0_i32_12 = arith.constant 0 : i32
    %17 = arith.cmpi ne, %16, %c0_i32_12 : i32
    scf.if %17 {
      %c0_13 = arith.constant 0 : index
      %c0_14 = arith.constant 0 : index
      %18 = vector.load %arg8[%c0_13, %c0_14] : memref<1x32xf32, #tpu.memory_space<vmem>>, vector<1x32xf32>
      %cst_15 = arith.constant 1.250000e-01 : f32
      %19 = vector.broadcast %cst_15 : f32 to vector<1x32xf32>
      %20 = arith.mulf %18, %19 : vector<1x32xf32>
      %c0_16 = arith.constant 0 : index
      %c0_17 = arith.constant 0 : index
      %21 = vector.load %arg9[%c0_16, %c0_17] : memref<1x32xf32, #tpu.memory_space<vmem>>, vector<1x32xf32>
      %cst_18 = arith.constant 1.250000e-01 : f32
      %22 = vector.broadcast %cst_18 : f32 to vector<1x32xf32>
      %23 = arith.mulf %21, %22 : vector<1x32xf32>
      %24 = arith.mulf %20, %20 : vector<1x32xf32>
      %25 = arith.subf %23, %24 : vector<1x32xf32>
      %cst_19 = arith.constant 0.000000e+00 : f32
      %26 = vector.broadcast %cst_19 : f32 to vector<1x32xf32>
      %27 = arith.maximumf %25, %26 : vector<1x32xf32>
      %c0_20 = arith.constant 0 : index
      %c0_21 = arith.constant 0 : index
      %28 = vector.load %arg2[%c0_20, %c0_21] : memref<1x32xf32, #tpu.memory_space<vmem>>, vector<1x32xf32>
      %cst_22 = arith.constant 9.99999974E-6 : f32
      %29 = vector.broadcast %cst_22 : f32 to vector<1x32xf32>
      %30 = arith.addf %27, %29 : vector<1x32xf32>
      %31 = math.rsqrt %30 : vector<1x32xf32>
      %32 = arith.mulf %28, %31 : vector<1x32xf32>
      %c0_23 = arith.constant 0 : index
      %c0_24 = arith.constant 0 : index
      %33 = vector.load %arg3[%c0_23, %c0_24] : memref<1x32xf32, #tpu.memory_space<vmem>>, vector<1x32xf32>
      %34 = arith.mulf %20, %32 : vector<1x32xf32>
      %35 = arith.subf %33, %34 : vector<1x32xf32>
      %c0_25 = arith.constant 0 : index
      %c0_26 = arith.constant 0 : index
      %36 = vector.load %arg4[%c0_25, %c0_26] : memref<128x32xf32, #tpu.memory_space<vmem>>, vector<128x32xf32>
      %37 = vector.broadcast %32 : vector<1x32xf32> to vector<128x32xf32>
      %38 = arith.mulf %36, %37 : vector<128x32xf32>
      %c0_27 = arith.constant 0 : index
      %c0_28 = arith.constant 0 : index
      %39 = vector.load %arg6[%c0_27, %c0_28] : memref<128x32xf32, #tpu.memory_space<vmem>>, vector<128x32xf32>
      tpu.vector_store %arg6[%c0_27, %c0_28], %38 {strides = array<i32>} : memref<128x32xf32, #tpu.memory_space<vmem>>, vector<128x32xf32>,
      %40 = vector.shape_cast %35 : vector<1x32xf32> to vector<1x32xf32>
      %41 = vector.broadcast %40 : vector<1x32xf32> to vector<8x32xf32>
      %cst_29 = arith.constant dense<0.000000e+00> : vector<8x128xf32>
      %42 = tpu.matmul %41, %36, %cst_29 {dimension_numbers = #tpu.dot_dimension_numbers<[1], [1], [0], [0], [0, 0, 1, 0], [], []>} : vector<8x32xf32>, vector<128x32xf32>, vector<8x128xf32> -> vector<8x128xf32>
      %43 = vector.extract_strided_slice %42 {offsets = [0, 0], sizes = [1, 128], strides = [1, 1]} : vector<8x128xf32> to vector<1x128xf32>
      %c0_30 = arith.constant 0 : index
      %c0_31 = arith.constant 0 : index
      %44 = vector.load %arg5[%c0_30, %c0_31] : memref<1x128xf32, #tpu.memory_space<vmem>>, vector<1x128xf32>
      %45 = arith.addf %43, %44 : vector<1x128xf32>
      %c0_32 = arith.constant 0 : index
      %c0_33 = arith.constant 0 : index
      %46 = vector.load %arg7[%c0_32, %c0_33] : memref<1x128xf32, #tpu.memory_space<vmem>>, vector<1x128xf32>
      tpu.vector_store %arg7[%c0_32, %c0_33], %45 {strides = array<i32>} : memref<1x128xf32, #tpu.memory_space<vmem>>, vector<1x128xf32>,
    } else {
    }
    return
  }
  func.func @transform_0(%arg0: i32) -> (i32, i32) {
    %c0_i32 = arith.constant 0 : i32
    %c0_i32_0 = arith.constant 0 : i32
    return %arg0, %c0_i32 : i32, i32
  }
  func.func @transform_1(%arg0: i32) -> (i32, i32) {
    %c0_i32 = arith.constant 0 : i32
    %c0_i32_0 = arith.constant 0 : i32
    %c0_i32_1 = arith.constant 0 : i32
    return %c0_i32, %c0_i32_0 : i32, i32
  }
  func.func @transform_2(%arg0: i32) -> (i32, i32) {
    %c0_i32 = arith.constant 0 : i32
    %c0_i32_0 = arith.constant 0 : i32
    %c0_i32_1 = arith.constant 0 : i32
    return %c0_i32, %c0_i32_0 : i32, i32
  }
  func.func @transform_3(%arg0: i32) -> (i32, i32) {
    %c0_i32 = arith.constant 0 : i32
    %c0_i32_0 = arith.constant 0 : i32
    %c0_i32_1 = arith.constant 0 : i32
    return %c0_i32, %c0_i32_0 : i32, i32
  }
  func.func @transform_4(%arg0: i32) -> (i32, i32) {
    %c0_i32 = arith.constant 0 : i32
    %c0_i32_0 = arith.constant 0 : i32
    %c0_i32_1 = arith.constant 0 : i32
    return %c0_i32, %c0_i32_0 : i32, i32
  }
  func.func @transform_5(%arg0: i32) -> (i32, i32) {
    %c0_i32 = arith.constant 0 : i32
    %c0_i32_0 = arith.constant 0 : i32
    %c0_i32_1 = arith.constant 0 : i32
    return %c0_i32, %c0_i32_0 : i32, i32
  }
  func.func @transform_6(%arg0: i32) -> (i32, i32) {
    %c0_i32 = arith.constant 0 : i32
    %c0_i32_0 = arith.constant 0 : i32
    %c0_i32_1 = arith.constant 0 : i32
    return %c0_i32, %c0_i32_0 : i32, i32
  }
}

</mosaic_0001>

<bundles_post_ra>
// kernel: tpu_custom_call.1
= control target key start
LH: loop header
LB: loop body
LE: loop exit
PB: predicated region body
PF: predicated region fallthrough
CT: control target
= control target key end

     0   :  { %vm32_vm0 = vcmask 261120   ;;  %vm27_vm1 = vcmask 253952   ;;  %v402_v2 = vmov 0.0|0.0   ;;  %v403_v5 = vmov 0.0   ;;  %s638_s0 = inlined_call_operand.vmem [shape: f32[8,32], index: 0, kind: input, shape index: {}]   ;;  %s639_s1 = inlined_call_operand.vmem [shape: f32[1,32], index: 1, kind: input, shape index: {}]   ;;  %s640_s2 = inlined_call_operand.vmem [shape: f32[1,32], index: 2, kind: input, shape index: {}]   ;;  %s641_s3 = inlined_call_operand.vmem [shape: f32[128,32], index: 3, kind: input, shape index: {}]   ;;  %s642_s4 = inlined_call_operand.vmem [shape: f32[1,128], index: 4, kind: input, shape index: {}]   ;;  %s643_s5 = inlined_call_operand.vmem [shape: f32[128,32], index: 5, kind: output, shape index: {0}]   ;;  %s644_s6 = inlined_call_operand.hbm [shape: f32[1,128], index: 6, kind: output, shape index: {1}]  }
   0x1   :  { %v444_v0 = vld [vmem:[%s641_s3] sm:$0xff]  ;;  %v449_v1 = vld [vmem:[%s641_s3 + $0x8] sm:$0xff]  ;;  %340 = vmatprep.subr.bf16.mxu0 %v402_v2  ;;  %vm456_vm2 = vmpackc.low %vm32_vm0, %vm32_vm0  ;;  %28 = vst.msk [vmem:[#allocation2] sm:$0x1] %vm27_vm1, %v403_v5  ;;  %vm404_vm3 = vmmov 0  }
   0x2   :  { %v341_v3 = vpack.c.bf16 %v449_v1, %v444_v0  ;;  %29 = vst.msk [vmem:[#allocation3] sm:$0x1] %vm27_vm1, %v403_v5  ;;  %337 = vmatprep.mubr.msk.f32.mxu0 %vm404_vm3, %v403_v5  ;;  %v468_v6 = vld [vmem:[%s641_s3 + $0x10] sm:$0xff]  ;;  %v473_v7 = vld [vmem:[%s641_s3 + $0x18] sm:$0xff]  ;;  %v30_v8 = vld [vmem:[%s638_s0] sm:$0xff] }
   0x3   :  { %v33_v9 = vsel %vm32_vm0, %v30_v8, 0.0  ;;  %v44_v10 = vmul.f32 %v30_v8, %v30_v8  ;;  %v345_v11 = vpack.c.bf16 %v473_v7, %v468_v6 }
   0x4   :  { %343 = vmatpush3.bf16.xpose.msk.msra.mxu0 %vm456_vm2, %v341_v3  ;;  %v34_v12 = vrot.slane %v33_v9, 4 }
   0x5   :  { %344 = vmatprep.subr.bf16.mxu0 %v402_v2 }
   0x6   :  { %12 = vsyncpa [#allocation5], 0  ;;  %v45_v13 = vsel %vm32_vm0, %v44_v10, 0.0  ;;  %v35_v14 = vadd.f32 %v34_v12, %v33_v9  ;;  %v488_v18 = vld [vmem:[%s641_s3 + $0x20] sm:$0xff]  ;;  %v493_v19 = vld [vmem:[%s641_s3 + $0x28] sm:$0xff]  ;;  %v88_v49 = vlaneseq  ;;  %s405_s12 = smov [#allocation4]  }
   0x7   :  { %v46_v15 = vrot.slane %v45_v13, 4  ;;  %v349_v22 = vpack.c.bf16 %v493_v19, %v488_v18  ;;  %v77_v31 = vld [vmem:[%s641_s3 + $0x30] sm:$0xff]  ;;  %v78_v32 = vld [vmem:[%s641_s3 + $0x38] sm:$0xff]  ;;  %v79_v35 = vld [vmem:[%s641_s3 + $0x40] sm:$0xff]  ;;  %s261_s13 = sshll.u32 %s405_s12, 4  ;;  %s262_s13 = int_to_ptr.vmem [resolvable:$true] %s261_s13 }
   0x8   :  { %v36_v16 = vrot.slane %v35_v14, 2  ;;  %v31_v25 = vld [vmem:[#allocation2] sm:$0x1]  ;;  %v353_v34 = vpack.c.bf16 %v78_v32, %v77_v31  ;;  %v80_v36 = vld [vmem:[%s641_s3 + $0x48] sm:$0xff]  ;;  %v81_v45 = vld [vmem:[%s641_s3 + $0x50] sm:$0xff]  ;;  %v89_v52 = vshrl.u32 %v88_v49, 7  ;;  %p383_p1 = scmp.lt.s32.totalorder %s262_s13, %s262_s13 }
   0x9   :  { %v47_v17 = vadd.f32 %v46_v15, %v45_v13  ;;  %v43_v28 = vld [vmem:[#allocation3] sm:$0x1]  ;;  %v357_v40 = vpack.c.bf16 %v80_v36, %v79_v35  ;;  %v82_v46 = vld [vmem:[%s641_s3 + $0x58] sm:$0xff]  ;;  %v84_v51 = vld [vmem:[%s641_s3 + $0x68] sm:$0xff]  ;;  %s378_s14 = scalar_lea.vmem %s262_s13, 16  ;;  %s382_s15 = scalar_lea.vmem %s262_s13, 32 }
   0xa   :  { %v37_v20 = vadd.f32 %v36_v16, %v35_v14  ;;  %v361_v48 = vpack.c.bf16 %v82_v46, %v81_v45  ;;  %v83_v50 = vld [vmem:[%s641_s3 + $0x60] sm:$0xff]  ;;  %v85_v56 = vld [vmem:[%s641_s3 + $0x70] sm:$0xff]  ;;  %v86_v57 = vld [vmem:[%s641_s3 + $0x78] sm:$0xff]  ;;  %v90_v59 = vsub.s32 0, %v89_v52  ;;  %p379_p0 = scmp.ne.s32.totalorder %s262_s13, %s378_s14  ;;  %p384_p2 = scmp.lt.s32.totalorder %s382_s15, %s378_s14 }
   0xb   :  { %v48_v21 = vrot.slane %v47_v17, 2  ;;  %v365_v53 = vpack.c.bf16 %v84_v51, %v83_v50  ;;  %v64_v54 = vld [vmem:[%s639_s1] sm:$0x1]  ;;  %v369_v61 = vpack.c.bf16 %v86_v57, %v85_v56 }
   0xc   :  { %347 = vmatpush3.bf16.xpose.msk.msra.mxu0 %vm456_vm2, %v345_v11  ;;  %v38_v23 = vrot.slane %v37_v20, 1  ;;  %v68_v8 = vld [vmem:[%s640_s2] sm:$0x1]  ;;  %p385_p3 = por %p384_p2, %p383_p1 }
   0xd   :  { %348 = vmatprep.subr.bf16.mxu0 %v402_v2  ;;  %v49_v24 = vadd.f32 %v48_v21, %v47_v17 }
   0xe   :  { %v39_v26 = vadd.f32 %v38_v23, %v37_v20  ;;  %p386_p4 = pnand %p385_p3, %p379_p0 }
   0xf   :  { %v50_v27 = vrot.slane %v49_v24, 1 }
  0x10   :  { %v40_v29 = vadd.f32 %v39_v26, %v31_v25 }
  0x11   :  { %v51_v30 = vadd.f32 %v50_v27, %v49_v24 }
  0x12   :  { %42 = vst.msk [vmem:[#allocation2] sm:$0x1] %vm27_vm1, %v40_v29 }
  0x13   :  { %v52_v33 = vadd.f32 %v51_v30, %v43_v28 }
  0x14   :  { %351 = vmatpush3.bf16.xpose.msk.msra.mxu0 %vm456_vm2, %v349_v22 }
  0x15   :  { %352 = vmatprep.subr.bf16.mxu0 %v402_v2  ;;  %53 = vst.msk [vmem:[#allocation3] sm:$0x1] %vm27_vm1, %v52_v33 }
  0x19   :  { %v57_v37 = vld [vmem:[#allocation2] sm:$0x1] }
  0x1a   :  { %v58_v38 = vmul.f32 0.125, %v57_v37 }
  0x1c   :  { %355 = vmatpush3.bf16.xpose.msk.msra.mxu0 %vm456_vm2, %v353_v34  ;;  %v59_v39 = vld [vmem:[#allocation3] sm:$0x1]  ;;  %v61_v42 = vmul.f32 %v58_v38, %v58_v38 }
  0x1d   :  { %356 = vmatprep.subr.bf16.mxu0 %v402_v2  ;;  %v60_v41 = vmul.f32 0.125, %v59_v39 }
  0x1f   :  { %v62_v43 = vsub.f32 %v60_v41, %v61_v42 }
  0x21   :  { %v63_v44 = vmax.f32 %v62_v43, 0.0 }
  0x23   :  { %v65_v47 = vadd.f32 1e-05, %v63_v44 }
  0x24   :  { %359 = vmatpush3.bf16.xpose.msk.msra.mxu0 %vm456_vm2, %v357_v40 }
  0x25   :  { %360 = vmatprep.subr.bf16.mxu0 %v402_v2  ;;  %376 = vrsqrt.f32 %v65_v47 }
  0x2c   :  { %363 = vmatpush3.bf16.xpose.msk.msra.mxu0 %vm456_vm2, %v361_v48 }
  0x2d   :  { %364 = vmatprep.subr.bf16.mxu0 %v402_v2 }
  0x2f   :  { %v377_v55 = vpop.eup %376 }
  0x30   :  { %v67_v58 = vmul.f32 %v377_v55, %v64_v54 }
  0x32   :  { %v91_v60 = vrot.slane %v67_v58, %v90_v59  ;;  %v69_v62 = vmul.f32 %v67_v58, %v58_v38 }
  0x34   :  { %367 = vmatpush3.bf16.xpose.msk.msra.mxu0 %vm456_vm2, %v365_v53  ;;  %v93_v63 = vmul.f32 %v91_v60, %v444_v0  ;;  %v94_v3 = vmul.f32 %v91_v60, %v449_v1  ;;  %v95_v5 = vmul.f32 %v91_v60, %v468_v6  ;;  %v96_v9 = vmul.f32 %v91_v60, %v473_v7 }
  0x35   :  { %368 = vmatprep.subr.bf16.mxu0 %v402_v2  ;;  %v97_v10 = vmul.f32 %v91_v60, %v488_v18  ;;  %v98_v11 = vmul.f32 %v91_v60, %v493_v19  ;;  %v99_v2 = vmul.f32 %v91_v60, %v77_v31  ;;  %v100_v12 = vmul.f32 %v91_v60, %v78_v32  ;;  %v250_v18 = vld [vmem:[%s642_s4] sm:$0x1] }
  0x36   :  { %v101_v13 = vmul.f32 %v91_v60, %v79_v35  ;;  %v102_v14 = vmul.f32 %v91_v60, %v80_v36  ;;  %v103_v15 = vmul.f32 %v91_v60, %v81_v45  ;;  %109 = vst.msk [vmem:[%s643_s5] sm:$0xff] %vm32_vm0, %v93_v63  ;;  %110 = vst.msk [vmem:[%s643_s5 + $0x8] sm:$0xff] %vm32_vm0, %v94_v3 }
  0x37   :  { %111 = vst.msk [vmem:[%s643_s5 + $0x10] sm:$0xff] %vm32_vm0, %v95_v5  ;;  %v104_v0 = vmul.f32 %v91_v60, %v82_v46  ;;  %v105_v1 = vmul.f32 %v91_v60, %v83_v50  ;;  %v106_v6 = vmul.f32 %v91_v60, %v84_v51  ;;  %v107_v7 = vmul.f32 %v91_v60, %v85_v56 }
  0x38   :  { %112 = vst.msk [vmem:[%s643_s5 + $0x18] sm:$0xff] %vm32_vm0, %v96_v9  ;;  %113 = vst.msk [vmem:[%s643_s5 + $0x20] sm:$0xff] %vm32_vm0, %v97_v10  ;;  %v70_v16 = vsub.f32 %v68_v8, %v69_v62  ;;  %v108_v17 = vmul.f32 %v91_v60, %v86_v57 }
  0x39   :  { %114 = vst.msk [vmem:[%s643_s5 + $0x28] sm:$0xff] %vm32_vm0, %v98_v11  ;;  %115 = vst.msk [vmem:[%s643_s5 + $0x30] sm:$0xff] %vm32_vm0, %v99_v2 }
  0x3a   :  { %116 = vst.msk [vmem:[%s643_s5 + $0x38] sm:$0xff] %vm32_vm0, %v100_v12  ;;  %117 = vst.msk [vmem:[%s643_s5 + $0x40] sm:$0xff] %vm32_vm0, %v101_v13  ;;  %v129_v4 = vrot.slane %v70_v16, %v90_v59 }
  0x3b   :  { %118 = vst.msk [vmem:[%s643_s5 + $0x48] sm:$0xff] %vm32_vm0, %v102_v14  ;;  %119 = vst.msk [vmem:[%s643_s5 + $0x50] sm:$0xff] %vm32_vm0, %v103_v15 }
  0x3c   :  { %371 = vmatpush3.bf16.xpose.msk.msra.mxu0 %vm456_vm2, %v369_v61  ;;  %120 = vst.msk [vmem:[%s643_s5 + $0x58] sm:$0xff] %vm32_vm0, %v104_v0  ;;  %121 = vst.msk [vmem:[%s643_s5 + $0x60] sm:$0xff] %vm32_vm0, %v105_v1 }
  0x3d   :  { %122 = vst.msk [vmem:[%s643_s5 + $0x68] sm:$0xff] %vm32_vm0, %v106_v6  ;;  %123 = vst.msk [vmem:[%s643_s5 + $0x70] sm:$0xff] %vm32_vm0, %v107_v7 }
  0x3e   :  { %124 = vst.msk [vmem:[%s643_s5 + $0x78] sm:$0xff] %vm32_vm0, %v108_v17 }
  0x43   :  { %338 = vmatmul.mubr.msk.f32.vlgmr.msra.gmra.mrb[0].mxu0 %vm32_vm0, %v129_v4 }
 0x116   :  { %v246_v19 = vpop.f32.mrb[0].mxu0 }
 0x117   :  { %v251_v20 = vadd.f32 %v250_v18, %v246_v19  ;;  %v339_v21 = vpop.f32.mrb[1].mxu0 }
 0x119   :  { %252 = vst [vmem:[#allocation4] sm:$0x1] %v251_v20 }
 0x11a   :  { %389 = shalt.err (!%p386_p4)
}
 0x11b   :  { %s390_s17 = scalar_lea.hbm %s644_s6, 16 }
 0x11c   :  { %p391_p5 = scmp.ne.s32.totalorder %s644_s6, %s390_s17  ;;  %p394_p6 = scmp.lt.u32.totalorder %s390_s17, %s644_s6 }
 0x11e   :  { %p396_p7 = pnand %p394_p6, %p391_p5 }
 0x120   :  { %399 = shalt.err (!%p396_p7)
}
 0x121   :  { %264 = dma.vmem_to_hbm [thread:$0]  %s262_s13, 16, %s644_s6, [#allocation5]  }
 0x122   :  { %400 = dma.done.wait [#allocation5], 16  }
 0x123   :  { %401 = vsyncadd [#allocation5], 4294967280 }
 0x124   :  { %270 = vsyncpa [#allocation5], 1 }

</bundles_post_ra>
